<compile_context>
chip_gen: v6e
topology: v6e:2x2x1
jax: 0.10.0
libtpu: 0.0.40
codegen_flags: <defaults>
</compile_context>

<pallas_src>
import functools

import numpy as np
import jax
import jax.numpy as jnp
from jax.experimental import pallas as pl
from jax.experimental.pallas import tpu as pltpu


def _round_up(x, m):
    return ((x + m - 1) // m) * m


# ----------------------------------------------------------------------------
# Fused DRRN kernel: packed 4-encoder GRU recurrence + Q head (one pallas_call)
# ----------------------------------------------------------------------------
@functools.lru_cache(maxsize=32)
def _build_drrn_call(T, Bp, B_pad, Ep4, Whp, Hp1):
    """Builds (and caches, keyed on static shapes) the fused pallas_call."""
    W3 = 3 * Whp

    def kernel(x_ref, lens_ref, rep_ref, wih_ref, whh_ref, bih_ref, bhh_ref,
               w1s_ref, w1a_ref, b1_ref, w2_ref, b2_ref, q_ref, xg_ref):
        # ---- Phase 1: input projection for all 4 encoders & all timesteps,
        # hoisted out of the recurrence as ONE MXU matmul (block-diag W_ih).
        gx_all = (jnp.dot(x_ref[...], wih_ref[...],
                          preferred_element_type=jnp.float32)
                  + bih_ref[...])                              # [T*Bp, 3*Whp]
        xg_ref[...] = gx_all.reshape(T, Bp, W3)

        lens = lens_ref[...]                                   # [Bp, Whp] int32
        whh = whh_ref[...]                                     # [Whp, 3*Whp]
        bhh = bhh_ref[...]                                     # [1, 3*Whp]

        # ---- Phase 2: ONE fused recurrence for all 4 encoders.
        def step(t, h):
            gx = xg_ref[t]                                     # [Bp, 3*Whp]
            gh = jnp.dot(h, whh, preferred_element_type=jnp.float32) + bhh
            # PyTorch GRU gate order (r, z, n); all slices 128-lane aligned.
            r = jax.nn.sigmoid(gx[:, :Whp] + gh[:, :Whp])
            z = jax.nn.sigmoid(gx[:, Whp:2 * Whp] + gh[:, Whp:2 * Whp])
            n = jnp.tanh(gx[:, 2 * Whp:] + r * gh[:, 2 * Whp:])
            h_new = (1.0 - z) * n + z * h
            # Freeze rows whose sequence already ended (packed-GRU semantics).
            return jnp.where(lens > t, h_new, h)

        h = jax.lax.fori_loop(0, T, step, jnp.zeros((Bp, Whp), jnp.float32))

        # ---- Phase 3: fused Q head (no second kernel launch).
        # State contribution: only the first B_pad rows hold distinct states.
        sp = jnp.dot(h[:B_pad], w1s_ref[...],
                     preferred_element_type=jnp.float32)       # [B_pad, Hp1]
        ha = jnp.dot(h, w1a_ref[...],
                     preferred_element_type=jnp.float32)       # [Bp, Hp1]
        # repeat-by-act_sizes gather as a small one-hot matmul [Bp, B_pad].
        iota = jax.lax.broadcasted_iota(jnp.int32, (Bp, B_pad), 1)
        sel = (rep_ref[...] == iota).astype(jnp.float32)       # [Bp, B_pad]
        hid = jnp.maximum(
            jnp.dot(sel, sp, preferred_element_type=jnp.float32)
            + ha + b1_ref[...], 0.0)                           # [Bp, Hp1]
        # act_scorer: VPU multiply + lane reduction (not a degenerate [N,H]@[H,1]).
        q_ref[...] = (jnp.sum(hid * w2_ref[...], axis=-1, keepdims=True)
                      + b2_ref[...])

    vmem = pl.BlockSpec(memory_space=pltpu.MemorySpace.VMEM)

    # Whole problem is VMEM-resident (single invocation, no grid).
    need = 4 * (T * Bp * Ep4 + T * Bp * W3 + Ep4 * W3 + Whp * W3
                + Bp * Whp + 2 * Whp * Hp1 + Bp * (Hp1 + 8) + 8 * W3)
    limit = int(min(max(need + (4 << 20), 16 << 20), 48 << 20))
    # TODO(synk): for very large T*Bp, tile Phase 1 over the time axis
    # (pltpu.emit_pipeline) instead of holding the whole xg scratch resident;
    # at DRRN text sizes the resident working set is a few hundred KiB.

    return pl.pallas_call(
        kernel,
        out_shape=jax.ShapeDtypeStruct((Bp, 1), jnp.float32),
        in_specs=[vmem] * 12,
        out_specs=vmem,
        scratch_shapes=[pltpu.VMEM((T, Bp, W3), jnp.float32)],
        compiler_params=pltpu.CompilerParams(vmem_limit_bytes=limit),
    )


# ----------------------------------------------------------------------------
# Parameter preparation: PyTorch layouts -> lane-packed block-diagonal weights
# ----------------------------------------------------------------------------
def prepare_kernel_params(raw, E, H):
    names = ("obs", "look", "inv", "act")          # packed encoder/lane order
    Ep4 = _round_up(4 * E, 128)                    # packed input width
    Whp = _round_up(4 * H, 128)                    # packed hidden width (=128 for H=32)
    Hp1 = _round_up(H, 128)                        # Q-head hidden width

    wih = np.zeros((Ep4, 3 * Whp), np.float32)     # block-diagonal fused W_ih
    whh = np.zeros((Whp, 3 * Whp), np.float32)     # block-diagonal fused W_hh
    bih = np.zeros((1, 3 * Whp), np.float32)
    bhh = np.zeros((1, 3 * Whp), np.float32)
    for k, name in enumerate(names):
        w_ih, w_hh, b_ih, b_hh = (np.asarray(a, np.float32) for a in raw[name])
        for g in range(3):                         # PyTorch gate order r, z, n
            col = g * Whp + k * H
            wih[k * E:(k + 1) * E, col:col + H] = w_ih[g * H:(g + 1) * H, :].T
            whh[k * H:(k + 1) * H, col:col + H] = w_hh[g * H:(g + 1) * H, :].T
            bih[0, col:col + H] = b_ih[g * H:(g + 1) * H]
            bhh[0, col:col + H] = b_hh[g * H:(g + 1) * H]

    # hidden Linear: torch weight [H, 4H], input column order obs|look|inv|act
    # (same order as the packed hidden state) -> split into state / act parts.
    w1_t = np.asarray(raw["w1"], np.float32).T     # [4H, H]
    w1s = np.zeros((Whp, Hp1), np.float32)
    w1a = np.zeros((Whp, Hp1), np.float32)
    w1s[:3 * H, :H] = w1_t[:3 * H, :]              # obs|look|inv rows
    w1a[3 * H:4 * H, :H] = w1_t[3 * H:, :]         # act rows
    b1 = np.zeros((1, Hp1), np.float32)
    b1[0, :H] = np.asarray(raw["b1"], np.float32)
    w2 = np.zeros((1, Hp1), np.float32)
    w2[0, :H] = np.asarray(raw["w2"], np.float32)[0]
    b2 = np.asarray(raw["b2"], np.float32).reshape(1, 1)

    return {
        "embedding": jnp.asarray(raw["embedding"], jnp.float32),
        "wih": jnp.asarray(wih), "whh": jnp.asarray(whh),
        "bih": jnp.asarray(bih), "bhh": jnp.asarray(bhh),
        "w1s": jnp.asarray(w1s), "w1a": jnp.asarray(w1a),
        "b1": jnp.asarray(b1), "w2": jnp.asarray(w2), "b2": jnp.asarray(b2),
        "E": E, "H": H, "Ep4": Ep4, "Whp": Whp, "Hp1": Hp1,
    }


# ----------------------------------------------------------------------------
# Forward pass
# ----------------------------------------------------------------------------
def drrn_forward(kp, state_batch, act_batch):
    """state_batch: list of (obs, look, inv) token-id lists.
       act_batch:   list (per batch item) of lists of token-id lists."""
    obs = [list(s[0]) for s in state_batch]
    look = [list(s[1]) for s in state_batch]
    inv = [list(s[2]) for s in state_batch]
    act_sizes = [len(a) for a in act_batch]
    flat_acts = [list(a) for acts in act_batch for a in acts]

    B = len(state_batch)
    N = len(flat_acts)
    groups = [obs, look, inv, flat_acts]                   # packed encoder order
    E, H = kp["E"], kp["H"]
    Ep4, Whp, Hp1 = kp["Ep4"], kp["Whp"], kp["Hp1"]

    max_len = max((len(s) for g in groups for s in g), default=1)
    T = _round_up(max(max_len, 1), 8)                      # bucket T -> fewer recompiles
    Bp = _round_up(max(B, N, 1), 8)
    B_pad = _round_up(max(B, 1), 8)

    # Token padding (time-major) + per-lane length map for the freeze mask.
    tok = np.zeros((4, T, Bp), np.int32)
    lens = np.zeros((Bp, Whp), np.int32)
    for gi, g in enumerate(groups):
        for bi, s in enumerate(g):
            lens[bi, gi * H:(gi + 1) * H] = len(s)
            if len(s):
                tok[gi, :len(s), bi] = np.asarray(s, np.int32)

    # Lane-pack the 4 encoders' embeddings: x[t*Bp+b, k*E:(k+1)*E] = emb[tok[k,t,b]]
    x4 = kp["embedding"][jnp.asarray(tok)]                 # [4, T, Bp, E]
    x = jnp.transpose(x4, (1, 2, 0, 3)).reshape(T * Bp, 4 * E)
    if Ep4 > 4 * E:
        x = jnp.pad(x, ((0, 0), (0, Ep4 - 4 * E)))

    # batch index for each flattened action (repeat-by-act_sizes gather).
    rep = np.zeros((Bp, 1), np.int32)
    if N:
        rep[:N, 0] = np.repeat(np.arange(B), act_sizes)

    call = _build_drrn_call(T, Bp, B_pad, Ep4, Whp, Hp1)
    q = call(x, jnp.asarray(lens), jnp.asarray(rep),
             kp["wih"], kp["whh"], kp["bih"], kp["bhh"],
             kp["w1s"], kp["w1a"], kp["b1"], kp["w2"], kp["b2"])[:N, 0]

    out, off = [], 0
    for n in act_sizes:
        out.append(q[off:off + n])
        off += n
    return tuple(out)


# ----------------------------------------------------------------------------
# Pure-JAX reference (for correctness check) — works on raw params
# ----------------------------------------------------------------------------
def _pad_embed_ref(seqs, emb):
    B = len(seqs)
    lengths = np.array([len(s) for s in seqs], np.int32)
    T = max(int(lengths.max()), 1)
    tok = np.zeros((T, B), np.int32)
    for i, s in enumerate(seqs):
        tok[:len(s), i] = np.asarray(s, np.int32)
    return emb[jnp.asarray(tok)], jnp.asarray(lengths)     # [T, B, E], [B]


def _gru_ref(x_tbe, lengths, w_ih, w_hh, b_ih, b_hh):
    T, B, _ = x_tbe.shape
    H = w_hh.shape[1]
    P = jax.lax.Precision.HIGHEST
    wih_t, whh_t = w_ih.T, w_hh.T

    def step(h, inp):
        x_t, t = inp
        gi = jnp.dot(x_t, wih_t, precision=P) + b_ih
        gh = jnp.dot(h, whh_t, precision=P) + b_hh
        r = jax.nn.sigmoid(gi[:, :H] + gh[:, :H])
        z = jax.nn.sigmoid(gi[:, H:2 * H] + gh[:, H:2 * H])
        n = jnp.tanh(gi[:, 2 * H:] + r * gh[:, 2 * H:])
        h_new = (1.0 - z) * n + z * h
        mask = lengths.reshape(B, 1) > t
        return jnp.where(mask, h_new, h), None

    h0 = jnp.zeros((B, H), jnp.float32)
    h, _ = jax.lax.scan(step, h0, (x_tbe, jnp.arange(T)))
    return h


def drrn_forward_ref(raw, state_batch, act_batch):
    obs = [list(s[0]) for s in state_batch]
    look = [list(s[1]) for s in state_batch]
    inv = [list(s[2]) for s in state_batch]
    act_sizes = [len(a) for a in act_batch]
    flat_acts = [list(a) for acts in act_batch for a in acts]
    emb = raw["embedding"]
    P = jax.lax.Precision.HIGHEST

    def run(seqs, p):
        x, l = _pad_embed_ref(seqs, emb)
        return _gru_ref(x, l, *p)

    act_out = run(flat_acts, raw["act"])
    obs_out = run(obs, raw["obs"])
    look_out = run(look, raw["look"])
    inv_out = run(inv, raw["inv"])
    state_out = jnp.concatenate([obs_out, look_out, inv_out], axis=1)
    rep_idx = np.repeat(np.arange(len(act_sizes)), act_sizes)
    z = jnp.concatenate([state_out[jnp.asarray(rep_idx)], act_out], axis=1)
    h = jnp.maximum(jnp.dot(z, raw["w1"].T, precision=P) + raw["b1"], 0.0)
    q = (jnp.dot(h, raw["w2"].T, precision=P) + raw["b2"])[:, 0]
    out, off = [], 0
    for n in act_sizes:
        out.append(q[off:off + n])
        off += n
    return tuple(out)


# ----------------------------------------------------------------------------
# Deterministic parameter initialization (PyTorch nn.GRU / nn.Linear layouts)
# ----------------------------------------------------------------------------
def init_raw_params(key, vocab_size, E, H):
    keys = jax.random.split(key, 9)

    def gru(k):
        kk = jax.random.split(k, 4)
        s = 1.0 / np.sqrt(H)
        return (jax.random.uniform(kk[0], (3 * H, E), jnp.float32, -s, s),
                jax.random.uniform(kk[1], (3 * H, H), jnp.float32, -s, s),
                jax.random.uniform(kk[2], (3 * H,), jnp.float32, -s, s),
                jax.random.uniform(kk[3], (3 * H,), jnp.float32, -s, s))

    s1 = 1.0 / np.sqrt(4 * H)
    s2 = 1.0 / np.sqrt(H)
    return {
        "embedding": jax.random.normal(keys[0], (vocab_size, E), jnp.float32),
        "obs": gru(keys[1]), "look": gru(keys[2]),
        "inv": gru(keys[3]), "act": gru(keys[4]),
        "w1": jax.random.uniform(keys[5], (H, 4 * H), jnp.float32, -s1, s1),
        "b1": jax.random.uniform(keys[6], (H,), jnp.float32, -s1, s1),
        "w2": jax.random.uniform(keys[7], (1, H), jnp.float32, -s2, s2),
        "b2": jax.random.uniform(keys[8], (1,), jnp.float32, -s2, s2),
    }


if __name__ == "__main__":
    vocab_size, embedding_dim, hidden_dim = 50, 32, 32

    raw = init_raw_params(jax.random.PRNGKey(0), vocab_size, embedding_dim, hidden_dim)
    kp = prepare_kernel_params(raw, embedding_dim, hidden_dim)

    # Synthetic token-id sequences (deterministic).
    rng = np.random.RandomState(0)

    def seq(n):
        return rng.randint(1, vocab_size, size=n).tolist()

    # batch of 2 states: (obs, look, inventory)
    state_batch = [
        (seq(7), seq(4), seq(3)),
        (seq(5), seq(6), seq(8)),
    ]
    # admissible action commands per batch item
    act_batch = [
        [seq(2), seq(4), seq(3)],
        [seq(5), seq(2)],
    ]

    q_values = drrn_forward(kp, state_batch, act_batch)
    q_values = jax.block_until_ready(q_values)

    q_ref = drrn_forward_ref(raw, state_batch, act_batch)
    for a, b in zip(q_values, q_ref):
        np.testing.assert_allclose(np.asarray(a), np.asarray(b), rtol=1e-3, atol=1e-3)

    print("KERNEL_OK")
</pallas_src>

<mosaic_0001>
module attributes {stable_mosaic.version = 11 : i64} {
  func.func @kernel(%arg0: memref<64x128xf32, #tpu.memory_space<vmem>>, %arg1: memref<8x128xi32, #tpu.memory_space<vmem>>, %arg2: memref<8x1xi32, #tpu.memory_space<vmem>>, %arg3: memref<128x384xf32, #tpu.memory_space<vmem>>, %arg4: memref<128x384xf32, #tpu.memory_space<vmem>>, %arg5: memref<1x384xf32, #tpu.memory_space<vmem>>, %arg6: memref<1x384xf32, #tpu.memory_space<vmem>>, %arg7: memref<128x128xf32, #tpu.memory_space<vmem>>, %arg8: memref<128x128xf32, #tpu.memory_space<vmem>>, %arg9: memref<1x128xf32, #tpu.memory_space<vmem>>, %arg10: memref<1x128xf32, #tpu.memory_space<vmem>>, %arg11: memref<1x1xf32, #tpu.memory_space<vmem>>, %arg12: memref<8x1xf32, #tpu.memory_space<vmem>>, %arg13: memref<8x8x384xf32, #tpu.memory_space<vmem>>) attributes {dimension_semantics = [], scalar_prefetch = 0 : i64, scratch_operands = 1 : i64, tpu.core_type = #tpu.core_type<tc>} {
    %c0 = arith.constant 0 : index
    %c0_0 = arith.constant 0 : index
    %0 = vector.load %arg0[%c0, %c0_0] : memref<64x128xf32, #tpu.memory_space<vmem>>, vector<64x128xf32>
    %c0_1 = arith.constant 0 : index
    %c0_2 = arith.constant 0 : index
    %1 = vector.load %arg3[%c0_1, %c0_2] : memref<128x384xf32, #tpu.memory_space<vmem>>, vector<128x384xf32>
    %cst = arith.constant dense<0.000000e+00> : vector<64x384xf32>
    %2 = tpu.matmul %0, %1, %cst {dimension_numbers = #tpu.dot_dimension_numbers<[1], [0], [0], [1], [0, 0, 1, 1], [], []>} : vector<64x128xf32>, vector<128x384xf32>, vector<64x384xf32> -> vector<64x384xf32>
    %c0_3 = arith.constant 0 : index
    %c0_4 = arith.constant 0 : index
    %3 = vector.load %arg5[%c0_3, %c0_4] : memref<1x384xf32, #tpu.memory_space<vmem>>, vector<1x384xf32>
    %4 = vector.broadcast %3 : vector<1x384xf32> to vector<64x384xf32>
    %5 = arith.addf %2, %4 : vector<64x384xf32>
    %6 = vector.shape_cast %5 : vector<64x384xf32> to vector<8x8x384xf32>
    %c0_5 = arith.constant 0 : index
    %c0_6 = arith.constant 0 : index
    %c0_7 = arith.constant 0 : index
    %7 = vector.load %arg13[%c0_5, %c0_6, %c0_7] : memref<8x8x384xf32, #tpu.memory_space<vmem>>, vector<8x8x384xf32>
    tpu.vector_store %arg13[%c0_5, %c0_6, %c0_7], %6 {strides = array<i32>} : memref<8x8x384xf32, #tpu.memory_space<vmem>>, vector<8x8x384xf32>,
    %c0_8 = arith.constant 0 : index
    %c0_9 = arith.constant 0 : index
    %8 = vector.load %arg1[%c0_8, %c0_9] : memref<8x128xi32, #tpu.memory_space<vmem>>, vector<8x128xi32>
    %c0_10 = arith.constant 0 : index
    %c0_11 = arith.constant 0 : index
    %9 = vector.load %arg4[%c0_10, %c0_11] : memref<128x384xf32, #tpu.memory_space<vmem>>, vector<128x384xf32>
    %c0_12 = arith.constant 0 : index
    %c0_13 = arith.constant 0 : index
    %10 = vector.load %arg6[%c0_12, %c0_13] : memref<1x384xf32, #tpu.memory_space<vmem>>, vector<1x384xf32>
    %cst_14 = arith.constant 0.000000e+00 : f32
    %11 = vector.broadcast %cst_14 : f32 to vector<8x128xf32>
    %c0_i32 = arith.constant 0 : i32
    %c8_i32 = arith.constant 8 : i32
    %12 = arith.addi %c0_i32, %c8_i32 : i32
    %c1_i32 = arith.constant 1 : i32
    %13 = scf.for %arg14 = %c0_i32 to %12 step %c1_i32 iter_args(%arg15 = %11) -> (vector<8x128xf32>)  : i32 {
      %40 = arith.index_cast %arg14 : i32 to index
      %c0_35 = arith.constant 0 : index
      %c0_36 = arith.constant 0 : index
      %41 = vector.load %arg13[%40, %c0_35, %c0_36] : memref<8x8x384xf32, #tpu.memory_space<vmem>>, vector<1x8x384xf32>
      %42 = vector.shape_cast %41 : vector<1x8x384xf32> to vector<8x384xf32>
      %cst_37 = arith.constant dense<0.000000e+00> : vector<8x384xf32>
      %43 = tpu.matmul %arg15, %9, %cst_37 {dimension_numbers = #tpu.dot_dimension_numbers<[1], [0], [0], [1], [0, 0, 1, 1], [], []>} : vector<8x128xf32>, vector<128x384xf32>, vector<8x384xf32> -> vector<8x384xf32>
      %44 = vector.broadcast %10 : vector<1x384xf32> to vector<8x384xf32>
      %45 = arith.addf %43, %44 : vector<8x384xf32>
      %46 = vector.extract_strided_slice %42 {offsets = [0, 0], sizes = [8, 128], strides = [1, 1]} : vector<8x384xf32> to vector<8x128xf32>
      %47 = vector.extract_strided_slice %45 {offsets = [0, 0], sizes = [8, 128], strides = [1, 1]} : vector<8x384xf32> to vector<8x128xf32>
      %48 = arith.addf %46, %47 : vector<8x128xf32>
      %49 = arith.negf %48 : vector<8x128xf32>
      %50 = math.exp %49 : vector<8x128xf32>
      %cst_38 = arith.constant 1.000000e+00 : f32
      %51 = vector.broadcast %cst_38 : f32 to vector<8x128xf32>
      %52 = arith.addf %51, %50 : vector<8x128xf32>
      %53 = arith.divf %51, %52 : vector<8x128xf32>
      %54 = vector.extract_strided_slice %42 {offsets = [0, 128], sizes = [8, 128], strides = [1, 1]} : vector<8x384xf32> to vector<8x128xf32>
      %55 = vector.extract_strided_slice %45 {offsets = [0, 128], sizes = [8, 128], strides = [1, 1]} : vector<8x384xf32> to vector<8x128xf32>
      %56 = arith.addf %54, %55 : vector<8x128xf32>
      %57 = arith.negf %56 : vector<8x128xf32>
      %58 = math.exp %57 : vector<8x128xf32>
      %cst_39 = arith.constant 1.000000e+00 : f32
      %59 = vector.broadcast %cst_39 : f32 to vector<8x128xf32>
      %60 = arith.addf %59, %58 : vector<8x128xf32>
      %61 = arith.divf %59, %60 : vector<8x128xf32>
      %62 = vector.extract_strided_slice %42 {offsets = [0, 256], sizes = [8, 128], strides = [1, 1]} : vector<8x384xf32> to vector<8x128xf32>
      %63 = vector.extract_strided_slice %45 {offsets = [0, 256], sizes = [8, 128], strides = [1, 1]} : vector<8x384xf32> to vector<8x128xf32>
      %64 = arith.mulf %53, %63 : vector<8x128xf32>
      %65 = arith.addf %62, %64 : vector<8x128xf32>
      %66 = math.tanh %65 : vector<8x128xf32>
      %cst_40 = arith.constant 1.000000e+00 : f32
      %67 = vector.broadcast %cst_40 : f32 to vector<8x128xf32>
      %68 = arith.subf %67, %61 : vector<8x128xf32>
      %69 = arith.mulf %68, %66 : vector<8x128xf32>
      %70 = arith.mulf %61, %arg15 : vector<8x128xf32>
      %71 = arith.addf %69, %70 : vector<8x128xf32>
      %72 = vector.broadcast %arg14 : i32 to vector<8x128xi32>
      %73 = arith.cmpi sgt, %8, %72 : vector<8x128xi32>
      %74 = arith.select %73, %71, %arg15 : vector<8x128xi1>, vector<8x128xf32>
      scf.yield %74 : vector<8x128xf32>
    }
    %c8_i32_15 = arith.constant 8 : i32
    %c0_16 = arith.constant 0 : index
    %c0_17 = arith.constant 0 : index
    %14 = vector.load %arg7[%c0_16, %c0_17] : memref<128x128xf32, #tpu.memory_space<vmem>>, vector<128x128xf32>
    %cst_18 = arith.constant dense<0.000000e+00> : vector<8x128xf32>
    %15 = tpu.matmul %13, %14, %cst_18 {dimension_numbers = #tpu.dot_dimension_numbers<[1], [0], [0], [1], [0, 0, 1, 1], [], []>} : vector<8x128xf32>, vector<128x128xf32>, vector<8x128xf32> -> vector<8x128xf32>
    %c0_19 = arith.constant 0 : index
    %c0_20 = arith.constant 0 : index
    %16 = vector.load %arg8[%c0_19, %c0_20] : memref<128x128xf32, #tpu.memory_space<vmem>>, vector<128x128xf32>
    %cst_21 = arith.constant dense<0.000000e+00> : vector<8x128xf32>
    %17 = tpu.matmul %13, %16, %cst_21 {dimension_numbers = #tpu.dot_dimension_numbers<[1], [0], [0], [1], [0, 0, 1, 1], [], []>} : vector<8x128xf32>, vector<128x128xf32>, vector<8x128xf32> -> vector<8x128xf32>
    %18 = tpu.iota {dimensions = array<i32: 1>} : vector<8x8xi32>
    %c0_22 = arith.constant 0 : index
    %c0_23 = arith.constant 0 : index
    %19 = vector.load %arg2[%c0_22, %c0_23] : memref<8x1xi32, #tpu.memory_space<vmem>>, vector<8x1xi32>
    %20 = vector.broadcast %19 : vector<8x1xi32> to vector<8x8xi32>
    %21 = arith.cmpi eq, %20, %18 : vector<8x8xi32>
    %22 = arith.extui %21 : vector<8x8xi1> to vector<8x8xi32>
    %23 = arith.sitofp %22 : vector<8x8xi32> to vector<8x8xf32>
    %cst_24 = arith.constant dense<0.000000e+00> : vector<8x128xf32>
    %24 = tpu.matmul %23, %15, %cst_24 {dimension_numbers = #tpu.dot_dimension_numbers<[1], [0], [0], [1], [0, 0, 1, 1], [], []>} : vector<8x8xf32>, vector<8x128xf32>, vector<8x128xf32> -> vector<8x128xf32>
    %25 = arith.addf %24, %17 : vector<8x128xf32>
    %c0_25 = arith.constant 0 : index
    %c0_26 = arith.constant 0 : index
    %26 = vector.load %arg9[%c0_25, %c0_26] : memref<1x128xf32, #tpu.memory_space<vmem>>, vector<1x128xf32>
    %27 = vector.broadcast %26 : vector<1x128xf32> to vector<8x128xf32>
    %28 = arith.addf %25, %27 : vector<8x128xf32>
    %cst_27 = arith.constant 0.000000e+00 : f32
    %29 = vector.broadcast %cst_27 : f32 to vector<8x128xf32>
    %30 = arith.maximumf %28, %29 : vector<8x128xf32>
    %c0_28 = arith.constant 0 : index
    %c0_29 = arith.constant 0 : index
    %31 = vector.load %arg10[%c0_28, %c0_29] : memref<1x128xf32, #tpu.memory_space<vmem>>, vector<1x128xf32>
    %32 = vector.broadcast %31 : vector<1x128xf32> to vector<8x128xf32>
    %33 = arith.mulf %30, %32 : vector<8x128xf32>
    %cst_30 = arith.constant dense<0.000000e+00> : vector<8xf32>
    %34 = vector.multi_reduction <add>, %33, %cst_30 [1] : vector<8x128xf32> to vector<8xf32>
    %35 = vector.shape_cast %34 : vector<8xf32> to vector<8x1xf32>
    %c0_31 = arith.constant 0 : index
    %c0_32 = arith.constant 0 : index
    %36 = vector.load %arg11[%c0_31, %c0_32] : memref<1x1xf32, #tpu.memory_space<vmem>>, vector<1x1xf32>
    %37 = vector.broadcast %36 : vector<1x1xf32> to vector<8x1xf32>
    %38 = arith.addf %35, %37 : vector<8x1xf32>
    %c0_33 = arith.constant 0 : index
    %c0_34 = arith.constant 0 : index
    %39 = vector.load %arg12[%c0_33, %c0_34] : memref<8x1xf32, #tpu.memory_space<vmem>>, vector<8x1xf32>
    tpu.vector_store %arg12[%c0_33, %c0_34], %38 {strides = array<i32>} : memref<8x1xf32, #tpu.memory_space<vmem>>, vector<8x1xf32>,
    return
  }
}

</mosaic_0001>

<bundles_post_ra>
// kernel: tpu_custom_call.1
= control target key start
LH: loop header
LB: loop body
LE: loop exit
PB: predicated region body
PF: predicated region fallthrough
CT: control target
= control target key end

     0   :  { %s1790_s0 = inlined_call_operand.hbm [shape: f32[64,128], index: 0, kind: input, shape index: {}]   ;;  %s1791_s1 = inlined_call_operand.vmem [shape: s32[8,128], index: 1, kind: input, shape index: {}]   ;;  %s1792_s2 = inlined_call_operand.vmem [shape: s32[8,1], index: 2, kind: input, shape index: {}]   ;;  %s1793_s3 = inlined_call_operand.hbm [shape: f32[128,384], index: 3, kind: input, shape index: {}]   ;;  %s1794_s4 = inlined_call_operand.hbm [shape: f32[128,384], index: 4, kind: input, shape index: {}]   ;;  %s1795_s5 = inlined_call_operand.vmem [shape: f32[1,384], index: 5, kind: input, shape index: {}]   ;;  %s1796_s6 = inlined_call_operand.vmem [shape: f32[1,384], index: 6, kind: input, shape index: {}]   ;;  %s1797_s7 = inlined_call_operand.hbm [shape: f32[128,128], index: 7, kind: input, shape index: {}]   ;;  %s1798_s8 = inlined_call_operand.hbm [shape: f32[128,128], index: 8, kind: input, shape index: {}]   ;;  %s1799_s9 = inlined_call_operand.vmem [shape: f32[1,128], index: 9, kind: input, shape index: {}]   ;;  %s1800_s10 = inlined_call_operand.vmem [shape: f32[1,128], index: 10, kind: input, shape index: {}]   ;;  %s1801_s11 = inlined_call_operand.<no memory space> [shape: f32[1,1], index: 11, kind: input, shape index: {}]   ;;  %s1802_s12 = inlined_call_operand.vmem [shape: f32[8,1], index: 12, kind: output, shape index: {}]  }
   0x1   :  { %v17_v0 = vstv %s1801_s11 }
   0x2   :  { %18 = vst [vmem:[#allocation3] sm:$0x1] %v17_v0 }
   0x3   :  { %19 = vsyncpa [#allocation5], 0 }
   0x4   :  { %20 = vsyncpa [#allocation7], 0 }
   0x5   :  { %21 = vsyncpa [#allocation10], 0  ;;  %s1374_s23 = smov [#allocation6]  }
   0x6   :  { %s43_s24 = sshll.u32 %s1374_s23, 4  ;;  %s44_s24 = int_to_ptr.vmem [resolvable:$true] %s43_s24 }
   0x7   :  { %s1260_s25 = scalar_lea.vmem %s44_s24, 6144  ;;  %p1265_p1 = scmp.lt.s32.totalorder %s44_s24, %s44_s24 }
   0x8   :  { %p1261_p0 = scmp.ne.s32.totalorder %s44_s24, %s1260_s25  ;;  %p1266_p2 = scmp.lt.s32.totalorder %s1260_s25, %s1260_s25 }
   0xa   :  { %p1267_p3 = por %p1266_p2, %p1265_p1 }
   0xc   :  { %p1268_p4 = pnand %p1267_p3, %p1261_p0 }
   0xe   :  { %1271 = shalt.err (!%p1268_p4)
}
   0xf   :  { %s1375_s26 = smov 384   ;;  %s1376_s27 = smov 24  }
  0x10   :  { %49 = dma.hbm_to_vmem [thread:$0]  %s1793_s3, 6144, %s44_s24, [#allocation7], %s1375_s26, %s1375_s26, %s1376_s27  }
  0x11   :  { %s1377_s29 = smov [#allocation9]   ;;  %s1378_s13 = smov [#allocation4]  }
  0x12   :  { %s71_s30 = sshll.u32 %s1377_s29, 4  ;;  %s27_s14 = sshll.u32 %s1378_s13, 4  ;;  %s72_s30 = int_to_ptr.vmem [resolvable:$true] %s71_s30  ;;  %s28_s14 = int_to_ptr.vmem [resolvable:$true] %s27_s14 }
  0x13   :  { %s1280_s15 = scalar_lea.vmem %s72_s30, 2048  ;;  %p1285_p6 = scmp.lt.s32.totalorder %s72_s30, %s72_s30 }
  0x14   :  { %p1281_p5 = scmp.ne.s32.totalorder %s72_s30, %s1280_s15  ;;  %p1286_p7 = scmp.lt.s32.totalorder %s1280_s15, %s1280_s15 }
  0x16   :  { %p1287_p8 = por %p1286_p7, %p1285_p6 }
  0x18   :  { %p1288_p9 = pnand %p1287_p8, %p1281_p5 }
  0x1a   :  { %1291 = shalt.err (!%p1288_p9)
}
  0x1b   :  { %s1379_s16 = smov 128   ;;  %s1380_s17 = smov 8  }
  0x1c   :  { %77 = dma.hbm_to_vmem [thread:$0]  %s1797_s7, 2048, %s72_s30, [#allocation10], %s1379_s16, %s1379_s16, %s1380_s17  }
  0x1d   :  { %s1300_s3 = scalar_lea.vmem %s28_s14, 1024  ;;  %p1305_p11 = scmp.lt.s32.totalorder %s28_s14, %s28_s14 }
  0x1e   :  { %p1301_p10 = scmp.ne.s32.totalorder %s28_s14, %s1300_s3  ;;  %p1306_p12 = scmp.lt.s32.totalorder %s1300_s3, %s1300_s3 }
  0x20   :  { %p1307_p13 = por %p1306_p12, %p1305_p11 }
  0x22   :  { %p1308_p0 = pnand %p1307_p13, %p1301_p10 }
  0x24   :  { %1311 = shalt.err (!%p1308_p0)
}
  0x25   :  { %33 = dma.hbm_to_vmem [thread:$0]  %s1790_s0, 1024, %s28_s14, [#allocation5], %s1379_s16, %s1379_s16, %s1380_s17  }
  0x26   :  { %s1381_s22 = smov [#allocation8]   ;;  %s1382_s24 = smov [#allocation11]  }
  0x27   :  { %s55_s23 = sshll.u32 %s1381_s22, 4  ;;  %s83_s7 = sshll.u32 %s1382_s24, 4  ;;  %s56_s23 = int_to_ptr.vmem [resolvable:$true] %s55_s23  ;;  %s84_s7 = int_to_ptr.vmem [resolvable:$true] %s83_s7 }
  0x28   :  { %s1320_s25 = scalar_lea.vmem %s56_s23, 6144  ;;  %p1325_p2 = scmp.lt.s32.totalorder %s56_s23, %s56_s23 }
  0x29   :  { %p1321_p1 = scmp.ne.s32.totalorder %s56_s23, %s1320_s25  ;;  %p1326_p3 = scmp.lt.s32.totalorder %s1320_s25, %s1320_s25 }
  0x2b   :  { %p1327_p4 = por %p1326_p3, %p1325_p2 }
  0x2d   :  { %p1328_p5 = pnand %p1327_p4, %p1321_p1 }
  0x2f   :  { %1331 = shalt.err (!%p1328_p5)
}
  0x30   :  { %61 = dma.hbm_to_vmem [thread:$0]  %s1794_s4, 6144, %s56_s23, [#allocation7], %s1375_s26, %s1375_s26, %s1376_s27  }
  0x31   :  { %s1340_s0 = scalar_lea.vmem %s84_s7, 2048  ;;  %p1345_p7 = scmp.lt.s32.totalorder %s84_s7, %s84_s7 }
  0x32   :  { %p1341_p6 = scmp.ne.s32.totalorder %s84_s7, %s1340_s0  ;;  %p1346_p8 = scmp.lt.s32.totalorder %s1340_s0, %s1340_s0 }
  0x34   :  { %p1347_p9 = por %p1346_p8, %p1345_p7 }
  0x36   :  { %p1348_p10 = pnand %p1347_p9, %p1341_p6 }
  0x38   :  { %1351 = shalt.err (!%p1348_p10)
}
  0x39   :  { %89 = dma.hbm_to_vmem [thread:$0]  %s1798_s8, 2048, %s84_s7, [#allocation10], %s1379_s16, %s1379_s16, %s1380_s17  }
  0x3a   :  { %1360 = dma.done.wait [#allocation5], 1024  }
  0x3b   :  { %1361 = vsyncadd [#allocation5], 4294966272 }
  0x3c   :  { %1362 = dma.done.wait [#allocation7], 12288  }
  0x3d   :  { %1363 = vsyncadd [#allocation7], 4294955008 }
  0x3e   :  { %1364 = dma.done.wait [#allocation10], 4096  }
  0x3f   :  { %1365 = vsyncadd [#allocation10], 4294963200  ;;  %v1803_v1 = vmov 0.0   ;;  %v1490_v2 = vld [vmem:[%s1791_s1] sm:$0xff]  ;;  %v1494_v4 = vld [vmem:[#allocation8 + $0x8] sm:$0xff] }
  0x40   :  { %248 = vmatprep.mubr.f32.mxu0 %v1803_v1  ;;  %1813 = vst [vmem:[#allocation15_spill] sm:$0xff] %v1490_v2  ;;  %v1492_v3 = vld [vmem:[#allocation8] sm:$0xff]  ;;  %1815 = vst [vmem:[#allocation17_spill] sm:$0xff] %v1494_v4  ;;  %v1496_v5 = vld [vmem:[#allocation8 + $0x10] sm:$0xff] }
  0x41   :  { %1814 = vst [vmem:[#allocation16_spill] sm:$0xff] %v1492_v3  ;;  %1816 = vst [vmem:[#allocation18_spill] sm:$0xff] %v1496_v5  ;;  %v1498_v6 = vld [vmem:[#allocation8 + $0x18] sm:$0xff]  ;;  %v1500_v7 = vld [vmem:[#allocation8 + $0x20] sm:$0xff] }
  0x42   :  { %1817 = vst [vmem:[#allocation19_spill] sm:$0xff] %v1498_v6  ;;  %1818 = vst [vmem:[#allocation20_spill] sm:$0xff] %v1500_v7  ;;  %v1502_v8 = vld [vmem:[#allocation8 + $0x28] sm:$0xff]  ;;  %v1504_v9 = vld [vmem:[#allocation8 + $0x30] sm:$0xff] }
  0x43   :  { %1819 = vst [vmem:[#allocation21_spill] sm:$0xff] %v1502_v8  ;;  %v1506_v10 = vld [vmem:[#allocation8 + $0x38] sm:$0xff]  ;;  %v1508_v11 = vld [vmem:[#allocation8 + $0x40] sm:$0xff]  ;;  %v1510_v12 = vld [vmem:[#allocation8 + $0x48] sm:$0xff] }
  0x44   :  { %v1512_v13 = vld [vmem:[#allocation8 + $0x50] sm:$0xff]  ;;  %v1514_v14 = vld [vmem:[#allocation8 + $0x58] sm:$0xff]  ;;  %v1516_v15 = vld [vmem:[#allocation8 + $0x60] sm:$0xff] }
  0x45   :  { %v1518_v16 = vld [vmem:[#allocation8 + $0x68] sm:$0xff]  ;;  %v1520_v17 = vld [vmem:[#allocation8 + $0x70] sm:$0xff]  ;;  %v1522_v18 = vld [vmem:[#allocation8 + $0x78] sm:$0xff] }
  0x46   :  { %v1524_v19 = vld [vmem:[#allocation8 + $0x80] sm:$0xff]  ;;  %v1526_v20 = vld [vmem:[#allocation8 + $0x88] sm:$0xff]  ;;  %v1528_v21 = vld [vmem:[#allocation8 + $0x90] sm:$0xff] }
  0x47   :  { %v1530_v22 = vld [vmem:[#allocation8 + $0x98] sm:$0xff]  ;;  %v1532_v23 = vld [vmem:[#allocation8 + $0xa0] sm:$0xff]  ;;  %v1534_v24 = vld [vmem:[#allocation8 + $0xa8] sm:$0xff] }
  0x48   :  { %v1536_v25 = vld [vmem:[#allocation8 + $0xb0] sm:$0xff]  ;;  %v1538_v26 = vld [vmem:[#allocation8 + $0xb8] sm:$0xff]  ;;  %v1540_v27 = vld [vmem:[#allocation8 + $0xc0] sm:$0xff] }
  0x49   :  { %v1542_v28 = vld [vmem:[#allocation8 + $0xc8] sm:$0xff]  ;;  %v1544_v29 = vld [vmem:[#allocation8 + $0xd0] sm:$0xff]  ;;  %v1546_v30 = vld [vmem:[#allocation8 + $0xd8] sm:$0xff] }
  0x4a   :  { %v1548_v31 = vld [vmem:[#allocation8 + $0xe0] sm:$0xff]  ;;  %v1550_v32 = vld [vmem:[#allocation8 + $0xe8] sm:$0xff]  ;;  %v1552_v33 = vld [vmem:[#allocation8 + $0xf0] sm:$0xff] }
  0x4b   :  { %v1554_v34 = vld [vmem:[#allocation8 + $0xf8] sm:$0xff]  ;;  %v1556_v35 = vld [vmem:[#allocation8 + $0x100] sm:$0xff]  ;;  %v1558_v36 = vld [vmem:[#allocation8 + $0x108] sm:$0xff] }
  0x4c   :  { %v1560_v37 = vld [vmem:[#allocation8 + $0x110] sm:$0xff]  ;;  %v1562_v38 = vld [vmem:[#allocation8 + $0x118] sm:$0xff]  ;;  %v1564_v39 = vld [vmem:[#allocation8 + $0x120] sm:$0xff] }
  0x4d   :  { %v1566_v40 = vld [vmem:[#allocation8 + $0x128] sm:$0xff]  ;;  %v1568_v41 = vld [vmem:[#allocation8 + $0x130] sm:$0xff]  ;;  %v1570_v42 = vld [vmem:[#allocation8 + $0x138] sm:$0xff] }
  0x4e   :  { %v1572_v43 = vld [vmem:[#allocation8 + $0x140] sm:$0xff]  ;;  %v1574_v44 = vld [vmem:[#allocation8 + $0x148] sm:$0xff]  ;;  %v1576_v45 = vld [vmem:[#allocation8 + $0x150] sm:$0xff] }
  0x4f   :  { %v1578_v46 = vld [vmem:[#allocation8 + $0x158] sm:$0xff]  ;;  %v1580_v47 = vld [vmem:[#allocation8 + $0x160] sm:$0xff]  ;;  %v1582_v48 = vld [vmem:[#allocation8 + $0x168] sm:$0xff] }
  0x50   :  { %v1584_v49 = vld [vmem:[#allocation8 + $0x170] sm:$0xff]  ;;  %v1586_v50 = vld [vmem:[#allocation8 + $0x178] sm:$0xff]  ;;  %v164_v53 = vld [vmem:[#allocation6 + $0x168] sm:$0xff] }
  0x51   :  { %v1591_v51 = vld [vmem:[%s1796_s6] sm:$0x7]  ;;  %v165_v52 = vld [vmem:[#allocation6 + $0x170] sm:$0xff]  ;;  %v156_v58 = vld [vmem:[#allocation6 + $0x128] sm:$0xff] }
  0x52   :  { %1820 = vst [vmem:[#allocation22_spill] sm:$0xff] %v1591_v51  ;;  %184 = vmatprep.subr.mxu0 %v165_v52  ;;  %v162_v54 = vld [vmem:[#allocation6 + $0x158] sm:$0xff]  ;;  %v161_v55 = vld [vmem:[#allocation6 + $0x150] sm:$0xff]  ;;  %v159_v56 = vld [vmem:[#allocation6 + $0x140] sm:$0xff] }
  0x53   :  { %185 = vmatpush1.msra.mxu0 %v164_v53  ;;  %v158_v57 = vld [vmem:[#allocation6 + $0x138] sm:$0xff]  ;;  %v155_v59 = vld [vmem:[#allocation6 + $0x120] sm:$0xff]  ;;  %v153_v61 = vld [vmem:[#allocation6 + $0x110] sm:$0xff] }
  0x54   :  { %186 = vmatprep.subr.mxu0 %v162_v54  ;;  %v166_v60 = vld [vmem:[#allocation6 + $0x178] sm:$0xff]  ;;  %v163_v62 = vld [vmem:[#allocation6 + $0x160] sm:$0xff]  ;;  %v152_v63 = vld [vmem:[#allocation6 + $0x108] sm:$0xff] }
  0x55   :  { %187 = vmatpush1.msra.mxu0 %v161_v55  ;;  %1057 = vmatprep.subr.mxu1 %v166_v60  ;;  %v160_v0 = vld [vmem:[#allocation6 + $0x148] sm:$0xff]  ;;  %v150_v52 = vld [vmem:[#allocation6 + $0xf8] sm:$0xff]  ;;  %v149_v53 = vld [vmem:[#allocation6 + $0xf0] sm:$0xff] }
  0x56   :  { %188 = vmatprep.subr.mxu0 %v159_v56  ;;  %1058 = vmatpush3.msra.mxu1 %v166_v60  ;;  %v157_v54 = vld [vmem:[#allocation6 + $0x130] sm:$0xff]  ;;  %v147_v55 = vld [vmem:[#allocation6 + $0xe0] sm:$0xff]  ;;  %v146_v56 = vld [vmem:[#allocation6 + $0xd8] sm:$0xff] }
  0x57   :  { %189 = vmatpush1.msra.mxu0 %v158_v57  ;;  %1059 = vmatprep.subr.mxu1 %v163_v62  ;;  %v154_v57 = vld [vmem:[#allocation6 + $0x118] sm:$0xff]  ;;  %v144_v1 = vld [vmem:[#allocation6 + $0xc8] sm:$0xff]  ;;  %v141_v60 = vld [vmem:[#allocation6 + $0xb0] sm:$0xff] }
  0x58   :  { %190 = vmatprep.subr.mxu0 %v156_v58  ;;  %1060 = vmatpush3.msra.mxu1 %v163_v62  ;;  %v143_v58 = vld [vmem:[#allocation6 + $0xc0] sm:$0xff]  ;;  %v148_v62 = vld [vmem:[#allocation6 + $0xe8] sm:$0xff] }
  0x59   :  { %191 = vmatpush1.msra.mxu0 %v155_v59  ;;  %1061 = vmatprep.subr.mxu1 %v160_v0  ;;  %v151_v59 = vld [vmem:[#allocation6 + $0x100] sm:$0xff] }
  0x5a   :  { %192 = vmatprep.subr.mxu0 %v153_v61  ;;  %1062 = vmatpush3.msra.mxu1 %v160_v0  ;;  %v140_v61 = vld [vmem:[#allocation6 + $0xa8] sm:$0xff]  ;;  %v137_v0 = vld [vmem:[#allocation6 + $0x90] sm:$0xff] }
  0x5b   :  { %193 = vmatpush1.msra.mxu0 %v152_v63  ;;  %1063 = vmatprep.subr.mxu1 %v157_v54  ;;  %v138_v63 = vld [vmem:[#allocation6 + $0x98] sm:$0xff] }
  0x5c   :  { %194 = vmatprep.subr.mxu0 %v150_v52  ;;  %1064 = vmatpush3.msra.mxu1 %v157_v54  ;;  %v145_v52 = vld [vmem:[#allocation6 + $0xd0] sm:$0xff]  ;;  %v134_v54 = vld [vmem:[#allocation6 + $0x78] sm:$0xff] }
  0x5d   :  { %195 = vmatpush1.msra.mxu0 %v149_v53  ;;  %1065 = vmatprep.subr.mxu1 %v154_v57  ;;  %v135_v53 = vld [vmem:[#allocation6 + $0x80] sm:$0xff] }
  0x5e   :  { %196 = vmatprep.subr.mxu0 %v147_v55  ;;  %1066 = vmatpush3.msra.mxu1 %v154_v57  ;;  %v142_v55 = vld [vmem:[#allocation6 + $0xb8] sm:$0xff]  ;;  %v139_v57 = vld [vmem:[#allocation6 + $0xa0] sm:$0xff] }
  0x5f   :  { %197 = vmatpush1.msra.mxu0 %v146_v56  ;;  %1067 = vmatprep.subr.mxu1 %v151_v59  ;;  %v132_v56 = vld [vmem:[#allocation6 + $0x68] sm:$0xff] }
  0x60   :  { %198 = vmatprep.subr.mxu0 %v144_v1  ;;  %1068 = vmatpush3.msra.mxu1 %v151_v59  ;;  %v131_v1 = vld [vmem:[#allocation6 + $0x60] sm:$0xff]  ;;  %v128_v59 = vld [vmem:[#allocation6 + $0x48] sm:$0xff] }
  0x61   :  { %199 = vmatpush1.msra.mxu0 %v143_v58  ;;  %1069 = vmatprep.subr.mxu1 %v148_v62  ;;  %v129_v58 = vld [vmem:[#allocation6 + $0x50] sm:$0xff] }
  0x62   :  { %200 = vmatprep.subr.mxu0 %v141_v60  ;;  %1070 = vmatpush3.msra.mxu1 %v148_v62  ;;  %v136_v60 = vld [vmem:[#allocation6 + $0x88] sm:$0xff]  ;;  %v125_v62 = vld [vmem:[#allocation6 + $0x30] sm:$0xff] }
  0x63   :  { %201 = vmatpush1.msra.mxu0 %v140_v61  ;;  %1071 = vmatprep.subr.mxu1 %v145_v52  ;;  %v126_v61 = vld [vmem:[#allocation6 + $0x38] sm:$0xff] }
  0x64   :  { %202 = vmatprep.subr.mxu0 %v138_v63  ;;  %1072 = vmatpush3.msra.mxu1 %v145_v52  ;;  %v133_v63 = vld [vmem:[#allocation6 + $0x70] sm:$0xff]  ;;  %v122_v52 = vld [vmem:[#allocation6 + $0x18] sm:$0xff] }
  0x65   :  { %203 = vmatpush1.msra.mxu0 %v137_v0  ;;  %1073 = vmatprep.subr.mxu1 %v142_v55  ;;  %v123_v0 = vld [vmem:[#allocation6 + $0x20] sm:$0xff] }
  0x66   :  { %204 = vmatprep.subr.mxu0 %v135_v53  ;;  %1074 = vmatpush3.msra.mxu1 %v142_v55  ;;  %v130_v53 = vld [vmem:[#allocation6 + $0x58] sm:$0xff]  ;;  %v119_v55 = vld [vmem:[#allocation6] sm:$0xff] }
  0x67   :  { %205 = vmatpush1.msra.mxu0 %v134_v54  ;;  %1075 = vmatprep.subr.mxu1 %v139_v57  ;;  %v120_v54 = vld [vmem:[#allocation6 + $0x8] sm:$0xff] }
  0x68   :  { %206 = vmatprep.subr.mxu0 %v132_v56  ;;  %1076 = vmatpush3.msra.mxu1 %v139_v57  ;;  %v127_v56 = vld [vmem:[#allocation6 + $0x40] sm:$0xff]  ;;  %v124_v57 = vld [vmem:[#allocation6 + $0x28] sm:$0xff] }
  0x69   :  { %207 = vmatpush1.msra.mxu0 %v131_v1  ;;  %1077 = vmatprep.subr.mxu1 %v136_v60  ;;  %v111_v1 = vld [vmem:[#allocation4] sm:$0xff] }
  0x6a   :  { %208 = vmatprep.subr.mxu0 %v129_v58  ;;  %1078 = vmatpush3.msra.mxu1 %v136_v60  ;;  %v121_v58 = vld [vmem:[#allocation6 + $0x10] sm:$0xff]  ;;  %v112_v60 = vld [vmem:[#allocation4 + $0x8] sm:$0xff] }
  0x6b   :  { %209 = vmatpush1.msra.mxu0 %v128_v59  ;;  %1079 = vmatprep.subr.mxu1 %v133_v63  ;;  %v1821_v59 = vmov 0.0  }
  0x6c   :  { %210 = vmatprep.subr.mxu0 %v126_v61  ;;  %1080 = vmatpush3.msra.mxu1 %v133_v63  ;;  %v113_v61 = vld [vmem:[#allocation4 + $0x10] sm:$0xff]  ;;  %v115_v63 = vld [vmem:[#allocation4 + $0x20] sm:$0xff] }
  0x6d   :  { %211 = vmatpush1.msra.mxu0 %v125_v62  ;;  %1081 = vmatprep.subr.mxu1 %v130_v53  ;;  %v114_v62 = vld [vmem:[#allocation4 + $0x18] sm:$0xff] }
  0x6e   :  { %212 = vmatprep.subr.mxu0 %v123_v0  ;;  %1082 = vmatpush3.msra.mxu1 %v130_v53  ;;  %v117_v0 = vld [vmem:[#allocation4 + $0x30] sm:$0xff]  ;;  %v118_v53 = vld [vmem:[#allocation4 + $0x38] sm:$0xff] }
  0x6f   :  { %213 = vmatpush1.msra.mxu0 %v122_v52  ;;  %1083 = vmatprep.subr.mxu1 %v127_v56  ;;  %v116_v52 = vld [vmem:[#allocation4 + $0x28] sm:$0xff] }
  0x70   :  { %214 = vmatprep.subr.mxu0 %v120_v54  ;;  %1084 = vmatpush3.msra.mxu1 %v127_v56  ;;  %v1806_v54 = vlaneseq }
  0x71   :  { %215 = vmatpush1.msra.mxu0 %v119_v55  ;;  %1085 = vmatprep.subr.mxu1 %v124_v57 }
  0x72   :  { %249 = vmatmul.mubr.f32.vlgmr.msra.gmra.mxu0 %v111_v1  ;;  %1086 = vmatpush3.msra.mxu1 %v124_v57  ;;  %v1601_v55 = vshrl.u32 %v1806_v54, 7 }
  0x73   :  { %254 = vmatprep.mubr.f32.mxu0 %v1821_v59  ;;  %1089 = vmatprep.mubr.f32.mxu1 %v111_v1  ;;  %v167_v1 = vld [vmem:[%s1795_s5] sm:$0x7]  ;;  %s1637_s5 = smov 0  }
  0x74   :  { %1087 = vmatprep.subr.mxu1 %v121_v58  ;;  %1822 = vst [vmem:[#allocation23_spill] sm:$0xff] %v1601_v55  ;;  %v1807_v56 = vsub.s32 0, %v1601_v55  ;;  %v1809_v57 = vsub.s32 1, %v1601_v55 }
  0x75   :  { %1088 = vmatpush3.msra.mxu1 %v121_v58 }
  0x76   :  { %255 = vmatmul.mubr.f32.gmra.mxu0 %v112_v60  ;;  %1090 = vmatmul.mubr.f32.vlgmr.msra.gmra.mxu1 %v112_v60  ;;  %v1610_v58 = vrot.slane %v167_v1, %v1807_v56  ;;  %v1810_v60 = vsub.s32 2, %v1601_v55 }
  0x77   :  { %260 = vmatprep.mubr.f32.mxu0 %v1821_v59  ;;  %1092 = vmatprep.mubr.f32.mxu1 %v113_v61 }
  0x7a   :  { %261 = vmatmul.mubr.f32.gmra.mxu0 %v113_v61  ;;  %1093 = vmatmul.mubr.f32.gmra.mxu1 %v114_v62 }
  0x7b   :  { %266 = vmatprep.mubr.f32.mxu0 %v1821_v59  ;;  %1095 = vmatprep.mubr.f32.mxu1 %v115_v63 }
  0x7e   :  { %267 = vmatmul.mubr.f32.gmra.mxu0 %v114_v62  ;;  %1096 = vmatmul.mubr.f32.gmra.mxu1 %v116_v52 }
  0x7f   :  { %272 = vmatprep.mubr.f32.mxu0 %v1821_v59  ;;  %1098 = vmatprep.mubr.f32.mxu1 %v117_v0 }
  0x82   :  { %273 = vmatmul.mubr.f32.gmra.mxu0 %v115_v63  ;;  %1099 = vmatmul.mubr.f32.gmra.mxu1 %v118_v53 }
  0x83   :  { %278 = vmatprep.mubr.f32.mxu0 %v1821_v59 }
  0x86   :  { %279 = vmatmul.mubr.f32.gmra.mxu0 %v116_v52 }
  0x87   :  { %284 = vmatprep.mubr.f32.mxu0 %v1821_v59 }
  0x8a   :  { %285 = vmatmul.mubr.f32.gmra.mxu0 %v117_v0  ;;  %v180_v0 = vrot.slane %v167_v1, %v1810_v60 }
  0x8b   :  { %290 = vmatprep.mubr.f32.mxu0 %v1821_v59  ;;  %v1615_v59 = vrot.slane %v167_v1, %v1809_v57 }
  0x8e   :  { %291 = vmatmul.mubr.f32.gmra.mxu0 %v118_v53 }
 0x132   :  { %v250_v61 = vpop.f32.mrf.mxu0 }
 0x133   :  { %v251_v62 = vadd.f32 %v250_v61, %v1610_v58 }
 0x134   :  { %v252_v63 = vpop.f32.mrf.mxu0 }
 0x135   :  { %402 = vst [vmem:[#allocation2] sm:$0xff] %v251_v62  ;;  %v253_v52 = vadd.f32 %v252_v63, %v1615_v59 }
 0x136   :  { %v256_v53 = vpop.f32.mrf.mxu0  ;;  %v1091_v56 = vpop.f32.mrf.mxu1 }
 0x137   :  { %403 = vst [vmem:[#allocation2 + $0x8] sm:$0xff] %v253_v52  ;;  %v257_v54 = vadd.f32 %v256_v53, %v1610_v58  ;;  %v369_v51 = vadd.f32 %v1091_v56, %v180_v0 }
 0x138   :  { %v258_v2 = vpop.f32.mrf.mxu0  ;;  %v363_v5 = vpop.f32.mrf.mxu1 }
 0x139   :  { %405 = vst [vmem:[#allocation2 + $0x18] sm:$0xff] %v257_v54  ;;  %v259_v57 = vadd.f32 %v258_v2, %v1615_v59  ;;  %407 = vst [vmem:[#allocation2 + $0x28] sm:$0xff] %v369_v51  ;;  %v364_v61 = vadd.f32 %v363_v5, %v180_v0 }
 0x13a   :  { %v262_v8 = vpop.f32.mrf.mxu0  ;;  %v1094_v62 = vpop.f32.mrf.mxu1 }
 0x13b   :  { %406 = vst [vmem:[#allocation2 + $0x20] sm:$0xff] %v259_v57  ;;  %v263_v1 = vadd.f32 %v262_v8, %v1610_v58  ;;  %404 = vst [vmem:[#allocation2 + $0x10] sm:$0xff] %v364_v61  ;;  %v379_v63 = vadd.f32 %v1094_v62, %v180_v0 }
 0x13c   :  { %v264_v60 = vpop.f32.mrf.mxu0  ;;  %v373_v53 = vpop.f32.mrf.mxu1 }
 0x13d   :  { %408 = vst [vmem:[#allocation2 + $0x30] sm:$0xff] %v263_v1  ;;  %v265_v52 = vadd.f32 %v264_v60, %v1615_v59  ;;  %413 = vst [vmem:[#allocation2 + $0x58] sm:$0xff] %v379_v63  ;;  %v374_v54 = vadd.f32 %v373_v53, %v180_v0 }
 0x13e   :  { %v268_v55 = vpop.f32.mrf.mxu0  ;;  %v1097_v56 = vpop.f32.mrf.mxu1 }
 0x13f   :  { %409 = vst [vmem:[#allocation2 + $0x38] sm:$0xff] %v265_v52  ;;  %v269_v2 = vadd.f32 %v268_v55, %v1610_v58  ;;  %410 = vst [vmem:[#allocation2 + $0x40] sm:$0xff] %v374_v54  ;;  %v389_v5 = vadd.f32 %v1097_v56, %v180_v0 }
 0x140   :  { %v270_v51 = vpop.f32.mrf.mxu0  ;;  %v383_v57 = vpop.f32.mrf.mxu1 }
 0x141   :  { %411 = vst [vmem:[#allocation2 + $0x48] sm:$0xff] %v269_v2  ;;  %v271_v8 = vadd.f32 %v270_v51, %v1615_v59  ;;  %419 = vst [vmem:[#allocation2 + $0x88] sm:$0xff] %v389_v5  ;;  %v384_v1 = vadd.f32 %v383_v57, %v180_v0 }
 0x142   :  { %v274_v61 = vpop.f32.mrf.mxu0  ;;  %v1100_v62 = vpop.f32.mrf.mxu1 }
 0x143   :  { %412 = vst [vmem:[#allocation2 + $0x50] sm:$0xff] %v271_v8  ;;  %v275_v60 = vadd.f32 %v274_v61, %v1610_v58  ;;  %416 = vst [vmem:[#allocation2 + $0x70] sm:$0xff] %v384_v1  ;;  %v399_v52 = vadd.f32 %v1100_v62, %v180_v0 }
 0x144   :  { %v276_v63 = vpop.f32.mrf.mxu0  ;;  %v393_v53 = vpop.f32.mrf.mxu1 }
 0x145   :  { %414 = vst [vmem:[#allocation2 + $0x60] sm:$0xff] %v275_v60  ;;  %v277_v55 = vadd.f32 %v276_v63, %v1615_v59  ;;  %425 = vst [vmem:[#allocation2 + $0xb8] sm:$0xff] %v399_v52  ;;  %v394_v2 = vadd.f32 %v393_v53, %v180_v0  ;;  %v1635_v52 = vmov 0.0  }
 0x146   :  { %v280_v54 = vpop.f32.mrf.mxu0 }
 0x147   :  { %415 = vst [vmem:[#allocation2 + $0x68] sm:$0xff] %v277_v55  ;;  %v281_v56 = vadd.f32 %v280_v54, %v1610_v58  ;;  %422 = vst [vmem:[#allocation2 + $0xa0] sm:$0xff] %v394_v2 }
 0x148   :  { %v282_v51 = vpop.f32.mrf.mxu0 }
 0x149   :  { %417 = vst [vmem:[#allocation2 + $0x78] sm:$0xff] %v281_v56  ;;  %v283_v5 = vadd.f32 %v282_v51, %v1615_v59 }
 0x14a   :  { %v286_v8 = vpop.f32.mrf.mxu0 }
 0x14b   :  { %418 = vst [vmem:[#allocation2 + $0x80] sm:$0xff] %v283_v5  ;;  %v287_v57 = vadd.f32 %v286_v8, %v1610_v58 }
 0x14c   :  { %v288_v61 = vpop.f32.mrf.mxu0 }
 0x14d   :  { %420 = vst [vmem:[#allocation2 + $0x90] sm:$0xff] %v287_v57  ;;  %v289_v1 = vadd.f32 %v288_v61, %v1615_v59 }
 0x14e   :  { %v292_v60 = vpop.f32.mrf.mxu0 }
 0x14f   :  { %421 = vst [vmem:[#allocation2 + $0x98] sm:$0xff] %v289_v1  ;;  %v293_v0 = vadd.f32 %v292_v60, %v1610_v58 }
 0x150   :  { %v294_v62 = vpop.f32.mrf.mxu0 }
 0x151   :  { %423 = vst [vmem:[#allocation2 + $0xa8] sm:$0xff] %v293_v0  ;;  %v295_v63 = vadd.f32 %v294_v62, %v1615_v59 }
 0x153   :  { %424 = vst [vmem:[#allocation2 + $0xb0] sm:$0xff] %v295_v63 }
 0x154 LB: > { %505 = vmatprep.subr.mxu0 %v1584_v49  ;;  %v1384_v58 = vmov 0.0   ;;  %v1823_v7 = vld [vmem:[#allocation20_spill] sm:$0xff]  ;;  %v1824_v6 = vld [vmem:[#allocation19_spill] sm:$0xff]  ;;  %v1825_v4 = vld [vmem:[#allocation17_spill] sm:$0xff]  ;;  %vm1385_vm0 = vmmov 0   ;;  %s979_s13 = smul.u32 24, %s1372_s5  ;;  %s1372_s5 = sphi %s1637_s5, %s481_s5   ;;  %v1368_v52 = vphi %v1635_v52, %v1836_v52  }
 0x155   : > { %506 = vmatpush1.msra.mxu0 %v1582_v48  ;;  %569 = vmatprep.mubr.f32.mxu0 %v1384_v58  ;;  %v1826_v3 = vld [vmem:[#allocation16_spill] sm:$0xff]  ;;  %v1827_v59 = vld [vmem:[#allocation21_spill] sm:$0xff]  ;;  %v1828_v55 = vld [vmem:[#allocation18_spill] sm:$0xff] }
 0x156   : > { %507 = vmatprep.subr.mxu0 %v1578_v46  ;;  %1101 = vmatprep.subr.mxu1 %v1384_v58  ;;  %v1829_v53 = vld [vmem:[#allocation23_spill] sm:$0xff]  ;;  %v1831_v2 = vld [vmem:[#allocation22_spill] sm:$0xff]  ;;  %s485_s14 = scalar_lea.vmem [#allocation2], %s979_s13 }
 0x157   : > { %508 = vmatpush1.msra.mxu0 %v1576_v45  ;;  %1102 = vmatpush3.msra.mxu1 %v1586_v50  ;;  %v1830_v54 = vsub.s32 0, %v1829_v53  ;;  %v1832_v57 = vsub.s32 1, %v1829_v53 }
 0x158   : > { %509 = vmatprep.subr.mxu0 %v1572_v43  ;;  %1103 = vmatprep.subr.mxu1 %v1384_v58 }
 0x159   : > { %510 = vmatpush1.msra.mxu0 %v1570_v42  ;;  %1104 = vmatpush3.msra.mxu1 %v1580_v47  ;;  %v493_v56 = vrot.slane %v1831_v2, %v1830_v54  ;;  %v497_v61 = vrot.slane %v1831_v2, %v1832_v57 }
 0x15a   : > { %511 = vmatprep.subr.mxu0 %v1566_v40  ;;  %1105 = vmatprep.subr.mxu1 %v1384_v58  ;;  %v486_v51 = vld [vmem:[%s485_s14] sm:$0xff] }
 0x15b   : > { %512 = vmatpush1.msra.mxu0 %v1564_v39  ;;  %1106 = vmatpush3.msra.mxu1 %v1574_v44 }
 0x15c   : > { %513 = vmatprep.subr.mxu0 %v1560_v37  ;;  %1107 = vmatprep.subr.mxu1 %v1384_v58 }
 0x15d   : > { %514 = vmatpush1.msra.mxu0 %v1558_v36  ;;  %1108 = vmatpush3.msra.mxu1 %v1568_v41 }
 0x15e   : > { %515 = vmatprep.subr.mxu0 %v1554_v34  ;;  %1109 = vmatprep.subr.mxu1 %v1384_v58 }
 0x15f   : > { %516 = vmatpush1.msra.mxu0 %v1552_v33  ;;  %1110 = vmatpush3.msra.mxu1 %v1562_v38 }
 0x160   : > { %517 = vmatprep.subr.mxu0 %v1548_v31  ;;  %1111 = vmatprep.subr.mxu1 %v1384_v58 }
 0x161   : > { %518 = vmatpush1.msra.mxu0 %v1546_v30  ;;  %1112 = vmatpush3.msra.mxu1 %v1556_v35 }
 0x162   : > { %519 = vmatprep.subr.mxu0 %v1542_v28  ;;  %1113 = vmatprep.subr.mxu1 %v1384_v58 }
 0x163   : > { %520 = vmatpush1.msra.mxu0 %v1540_v27  ;;  %1114 = vmatpush3.msra.mxu1 %v1550_v32 }
 0x164   : > { %521 = vmatprep.subr.mxu0 %v1536_v25  ;;  %1115 = vmatprep.subr.mxu1 %v1384_v58 }
 0x165   : > { %522 = vmatpush1.msra.mxu0 %v1534_v24  ;;  %1116 = vmatpush3.msra.mxu1 %v1544_v29 }
 0x166   : > { %523 = vmatprep.subr.mxu0 %v1530_v22  ;;  %1117 = vmatprep.subr.mxu1 %v1384_v58 }
 0x167   : > { %524 = vmatpush1.msra.mxu0 %v1528_v21  ;;  %1118 = vmatpush3.msra.mxu1 %v1538_v26 }
 0x168   : > { %525 = vmatprep.subr.mxu0 %v1524_v19  ;;  %1119 = vmatprep.subr.mxu1 %v1384_v58 }
 0x169   : > { %526 = vmatpush1.msra.mxu0 %v1522_v18  ;;  %1120 = vmatpush3.msra.mxu1 %v1532_v23 }
 0x16a   : > { %527 = vmatprep.subr.mxu0 %v1518_v16  ;;  %1121 = vmatprep.subr.mxu1 %v1384_v58 }
 0x16b   : > { %528 = vmatpush1.msra.mxu0 %v1516_v15  ;;  %1122 = vmatpush3.msra.mxu1 %v1526_v20 }
 0x16c   : > { %529 = vmatprep.subr.mxu0 %v1512_v13  ;;  %1123 = vmatprep.subr.mxu1 %v1384_v58 }
 0x16d   : > { %530 = vmatpush1.msra.mxu0 %v1510_v12  ;;  %1124 = vmatpush3.msra.mxu1 %v1520_v17 }
 0x16e   : > { %531 = vmatprep.subr.mxu0 %v1506_v10  ;;  %1125 = vmatprep.subr.mxu1 %v1384_v58 }
 0x16f   : > { %532 = vmatpush1.msra.mxu0 %v1504_v9  ;;  %1126 = vmatpush3.msra.mxu1 %v1514_v14 }
 0x170   : > { %533 = vmatprep.subr.mxu0 %v1823_v7  ;;  %1127 = vmatprep.subr.mxu1 %v1384_v58 }
 0x171   : > { %534 = vmatpush1.msra.mxu0 %v1824_v6  ;;  %1128 = vmatpush3.msra.mxu1 %v1508_v11 }
 0x172   : > { %535 = vmatprep.subr.mxu0 %v1825_v4  ;;  %1129 = vmatprep.subr.mxu1 %v1384_v58 }
 0x173   : > { %536 = vmatpush1.msra.mxu0 %v1826_v3  ;;  %1130 = vmatpush3.msra.mxu1 %v1827_v59  ;;  %v487_v59 = vld [vmem:[%s485_s14 + $0x8] sm:$0xff] }
 0x174   : > { %570 = vmatmul.mubr.f32.vlgmr.msra.gmra.mxu0 %v1368_v52  ;;  %1131 = vmatprep.subr.mxu1 %v1384_v58 }
 0x175   : > { %1132 = vmatpush3.msra.mxu1 %v1828_v55  ;;  %1133 = vmatprep.mubr.msk.f32.mxu1 %vm1385_vm0, %v1384_v58 }
 0x176   : > { %1134 = vmatmul.mubr.f32.vlgmr.msra.gmra.mxu1 %v1368_v52 }
 0x234   : > { %v571_v5 = vpop.f32.mrf.mxu0 }
 0x235   : > { %v572_v8 = vadd.f32 %v571_v5, %v493_v56  ;;  %v1833_v56 = vsub.s32 2, %v1829_v53 }
 0x236   : > { %v573_v1 = vpop.f32.mrf.mxu0  ;;  %v642_v60 = vpop.f32.mrf.mxu1 }
 0x237   : > { %v646_v0 = vadd.f32 %v572_v8, %v486_v51  ;;  %v574_v58 = vadd.f32 %v573_v1, %v497_v61  ;;  %v501_v5 = vrot.slane %v1831_v2, %v1833_v56  ;;  %v488_v8 = vld [vmem:[%s485_s14 + $0x10] sm:$0xff] }
 0x238   : > { %v1135_v62 = vpop.f32.mrf.mxu1 }
 0x239   : > { %v972_v63 = vmul.f32 -1.442695, %v646_v0  ;;  %v653_v55 = vadd.f32 %v574_v58, %v487_v59  ;;  %v643_v7 = vadd.f32 %v642_v60, %v501_v5  ;;  %v667_v62 = vstv %s1372_s5  ;;  %v1834_v59 = vld [vmem:[#allocation15_spill] sm:$0xff]  ;;  %s481_s5 = sadd.s32 1, %s1372_s5  }
 0x23a   : > { %vm668_vm1 = vcmp.gt.s32.totalorder %v1834_v59, %v667_v62  ;;  %p478_p11 = scmp.ge.s32.totalorder %s481_s5, 8  }
 0x23b   : > { %1241 = vpow2.f32 %v972_v63  ;;  %v973_v3 = vmul.f32 -1.442695, %v653_v55  ;;  %v684_v60 = vld [vmem:[#allocation9 + $0x70] sm:$0xff] (%p478_p11)  ;;  %vm1386_vm2 = vmmov (%p478_p11), 0   ;;  %v1387_v56 = vmov (%p478_p11), 0   ;;  %v682_v9 = vld [vmem:[#allocation9 + $0x60] sm:$0xff] (%p478_p11) }
 0x23c   :  { %1251 = vset.pattern.permute.xlu0 (%p478_p11), %v1387_v56  ;;  %v844_v10 = vld [vmem:[%s1792_s2] sm:$0xff] (%p478_p11)  ;;  %v770_v13 = vld [vmem:[#allocation11 + $0x70] sm:$0xff] (%p478_p11)  ;;  %v769_v15 = vld [vmem:[#allocation11 + $0x68] sm:$0xff] (%p478_p11)  ;;  %v1838_v39 = vlaneseq (%p478_p11)  ;;  %vm851_vm4 = vcmask (%p478_p11), 64512   ;;  %vm952_vm5 = vcmask (%p478_p11), 7168  }
 0x23d   : > { %1243 = vpow2.f32 %v973_v3  ;;  %v771_v11 = vld [vmem:[#allocation11 + $0x78] sm:$0xff] (%p478_p11)  ;;  %846 = vperm.xlu0 (%p478_p11), %1251, %v844_v10   ;;  %v680_v14 = vld [vmem:[#allocation9 + $0x50] sm:$0xff] (%p478_p11)  ;;  %v679_v16 = vld [vmem:[#allocation9 + $0x48] sm:$0xff] (%p478_p11) }
 0x23e   :  { %v681_v12 = vld [vmem:[#allocation9 + $0x58] sm:$0xff] (%p478_p11)  ;;  %v768_v17 = vld [vmem:[#allocation11 + $0x60] sm:$0xff] (%p478_p11)  ;;  %v766_v21 = vld [vmem:[#allocation11 + $0x50] sm:$0xff] (%p478_p11)  ;;  %v843_v40 = vand.u32 (%p478_p11), 127, %v1838_v39 }
 0x23f   :  { %v678_v18 = vld [vmem:[#allocation9 + $0x40] sm:$0xff] (%p478_p11)  ;;  %v767_v19 = vld [vmem:[#allocation11 + $0x58] sm:$0xff] (%p478_p11)  ;;  %v676_v22 = vld [vmem:[#allocation9 + $0x30] sm:$0xff] (%p478_p11) }
 0x240   :  { %v677_v20 = vld [vmem:[#allocation9 + $0x38] sm:$0xff] (%p478_p11)  ;;  %v765_v23 = vld [vmem:[#allocation11 + $0x48] sm:$0xff] (%p478_p11)  ;;  %v764_v25 = vld [vmem:[#allocation11 + $0x40] sm:$0xff] (%p478_p11) }
 0x241   :  { %v675_v24 = vld [vmem:[#allocation9 + $0x28] sm:$0xff] (%p478_p11)  ;;  %v674_v26 = vld [vmem:[#allocation9 + $0x20] sm:$0xff] (%p478_p11)  ;;  %v763_v27 = vld [vmem:[#allocation11 + $0x38] sm:$0xff] (%p478_p11) }
 0x242   :  { %v673_v28 = vld [vmem:[#allocation9 + $0x18] sm:$0xff] (%p478_p11)  ;;  %v762_v29 = vld [vmem:[#allocation11 + $0x30] sm:$0xff] (%p478_p11)  ;;  %v761_v31 = vld [vmem:[#allocation11 + $0x28] sm:$0xff] (%p478_p11) }
 0x243   :  { %v672_v30 = vld [vmem:[#allocation9 + $0x10] sm:$0xff] (%p478_p11)  ;;  %v671_v32 = vld [vmem:[#allocation9 + $0x8] sm:$0xff] (%p478_p11)  ;;  %v760_v33 = vld [vmem:[#allocation11 + $0x20] sm:$0xff] (%p478_p11) }
 0x244   :  { %v670_v34 = vld [vmem:[#allocation9] sm:$0xff] (%p478_p11)  ;;  %v759_v35 = vld [vmem:[#allocation11 + $0x18] sm:$0xff] (%p478_p11)  ;;  %v758_v36 = vld [vmem:[#allocation11 + $0x10] sm:$0xff] (%p478_p11) }
 0x245   :  { %v757_v37 = vld [vmem:[#allocation11 + $0x8] sm:$0xff] (%p478_p11)  ;;  %v756_v38 = vld [vmem:[#allocation11] sm:$0xff] (%p478_p11)  ;;  %v976_v48 = vld [vmem:[%s1799_s9] ss:$0 sm:$0xff] (%p478_p11) }
 0x246   :  { %v977_v2 = vld [vmem:[%s1800_s10] ss:$0 sm:$0xff] (%p478_p11) }
 0x248   : > { %v1242_v54 = vpop.eup %1241 }
 0x249   : > { %v650_v4 = vadd.f32 1.0, %v1242_v54 }
 0x24a   : > { %v1244_v57 = vpop.eup %1243 }
 0x24b   : > { %1245 = vrcp.f32 %v650_v4  ;;  %v657_v6 = vadd.f32 1.0, %v1244_v57 }
 0x24d   : > { %1247 = vrcp.f32 %v657_v6  ;;  %v1837_v6 = vmov (%p478_p11), 0.0  }
 0x24e   :  { %1136 = vmatprep.subr.mxu0 (%p478_p11), %v1837_v6  ;;  %1171 = vmatprep.subr.mxu1 (%p478_p11), %v1837_v6 }
 0x24f   :  { %1168 = vmatprep.mubr.msk.f32.mxu0 (%p478_p11), %vm1386_vm2, %v1837_v6  ;;  %1203 = vmatprep.mubr.msk.f32.mxu1 (%p478_p11), %vm1386_vm2, %v1837_v6 }
 0x250   :  { %1172 = vmatpush3.msra.mxu1 (%p478_p11), %v771_v11 }
 0x251   :  { %1173 = vmatprep.subr.mxu1 (%p478_p11), %v1837_v6 }
 0x252   :  { %1174 = vmatpush3.msra.mxu1 (%p478_p11), %v770_v13 }
 0x253   :  { %1175 = vmatprep.subr.mxu1 (%p478_p11), %v1837_v6 }
 0x254   :  { %1176 = vmatpush3.msra.mxu1 (%p478_p11), %v769_v15 }
 0x255   :  { %1177 = vmatprep.subr.mxu1 (%p478_p11), %v1837_v6 }
 0x256   :  { %1178 = vmatpush3.msra.mxu1 (%p478_p11), %v768_v17 }
 0x257   :  { %1179 = vmatprep.subr.mxu1 (%p478_p11), %v1837_v6 }
 0x258   : > { %v1246_v51 = vpop.eup %1245  ;;  %1180 = vmatpush3.msra.mxu1 (%p478_p11), %v767_v19 }
 0x259   : > { %v660_v61 = vmul.f32 %v1246_v51, %v643_v7  ;;  %v685_v7 = vld [vmem:[#allocation9 + $0x78] sm:$0xff] (%p478_p11)  ;;  %1181 = vmatprep.subr.mxu1 (%p478_p11), %v1837_v6 }
 0x25a   : > { %v1248_v0 = vpop.eup %1247  ;;  %1137 = vmatpush3.msra.mxu0 (%p478_p11), %v685_v7  ;;  %1182 = vmatpush3.msra.mxu1 (%p478_p11), %v766_v21  ;;  %v978_v51 = vld [vmem:[#allocation3] ss:$0 sm:$0xff] (%p478_p11) }
 0x25b   : > { %v661_v1 = vadd.f32 %v660_v61, %v488_v8  ;;  %v663_v63 = vsub.f32 1.0, %v1248_v0  ;;  %v665_v58 = vmul.f32 %v1368_v52, %v1248_v0  ;;  %1138 = vmatprep.subr.mxu0 (%p478_p11), %v1837_v6  ;;  %1183 = vmatprep.subr.mxu1 (%p478_p11), %v1837_v6 }
 0x25c   :  { %1139 = vmatpush3.msra.mxu0 (%p478_p11), %v684_v60  ;;  %1184 = vmatpush3.msra.mxu1 (%p478_p11), %v765_v23 }
 0x25d   : > { %1249 = vtanh.f32 %v661_v1  ;;  %1140 = vmatprep.subr.mxu0 (%p478_p11), %v1837_v6  ;;  %1185 = vmatprep.subr.mxu1 (%p478_p11), %v1837_v6 }
 0x25e   :  { %1186 = vmatpush3.msra.mxu1 (%p478_p11), %v764_v25 }
 0x25f   :  { %1187 = vmatprep.subr.mxu1 (%p478_p11), %v1837_v6 }
 0x260   :  { %1188 = vmatpush3.msra.mxu1 (%p478_p11), %v763_v27 }
 0x261   :  { %1189 = vmatprep.subr.mxu1 (%p478_p11), %v1837_v6 }
 0x262   :  { %1190 = vmatpush3.msra.mxu1 (%p478_p11), %v762_v29 }
 0x263   :  { %1191 = vmatprep.subr.mxu1 (%p478_p11), %v1837_v6 }
 0x264   :  { %1192 = vmatpush3.msra.mxu1 (%p478_p11), %v761_v31 }
 0x265   :  { %1193 = vmatprep.subr.mxu1 (%p478_p11), %v1837_v6 }
 0x266   :  { %1194 = vmatpush3.msra.mxu1 (%p478_p11), %v760_v33 }
 0x267   :  { %1195 = vmatprep.subr.mxu1 (%p478_p11), %v1837_v6 }
 0x268   :  { %1196 = vmatpush3.msra.mxu1 (%p478_p11), %v759_v35 }
 0x269   :  { %1197 = vmatprep.subr.mxu1 (%p478_p11), %v1837_v6 }
 0x26a   : > { %v1250_v3 = vpop.eup %1249  ;;  %1198 = vmatpush3.msra.mxu1 (%p478_p11), %v758_v36 }
 0x26b   : > { %v664_v4 = vmul.f32 %v1250_v3, %v663_v63  ;;  %1199 = vmatprep.subr.mxu1 (%p478_p11), %v1837_v6 }
 0x26c   :  { %1200 = vmatpush3.msra.mxu1 (%p478_p11), %v757_v37 }
 0x26d   : > { %v666_v55 = vadd.f32 %v665_v58, %v664_v4  ;;  %480 = sbr.rel (!%p478_p11) target bundleno = 340 (0x154), region = 96  ;;  %1201 = vmatprep.subr.mxu1 (%p478_p11), %v1837_v6 }
 0x26e   :  { %1202 = vmatpush3.msra.mxu1 (%p478_p11), %v756_v38 }
 0x26f   : > { %v1727_v52 = vsel %vm668_vm1, %v666_v55, %v1368_v52  }
 0x270   : > { %v1835_v54 = vmov %v1727_v52 }
 0x271   : > { %v1836_v52 = vmov %v1835_v54  ;;  %1204 = vmatmul.mubr.f32.vlgmr.msra.gmra.mxu1 (%p478_p11), %v1835_v54 }
 0x272   :  { %v683_v52 = vld [vmem:[#allocation9 + $0x68] sm:$0xff] }
 0x273   :  { %1141 = vmatpush3.msra.mxu0 %v683_v52 }
 0x274   :  { %1142 = vmatprep.subr.mxu0 %v1837_v6 }
 0x275   :  { %1143 = vmatpush3.msra.mxu0 %v682_v9 }
 0x276   :  { %1144 = vmatprep.subr.mxu0 %v1837_v6 }
 0x277   :  { %1145 = vmatpush3.msra.mxu0 %v681_v12 }
 0x278   :  { %1146 = vmatprep.subr.mxu0 %v1837_v6 }
 0x279   :  { %1147 = vmatpush3.msra.mxu0 %v680_v14 }
 0x27a   :  { %1148 = vmatprep.subr.mxu0 %v1837_v6 }
 0x27b   :  { %1149 = vmatpush3.msra.mxu0 %v679_v16 }
 0x27c   :  { %1150 = vmatprep.subr.mxu0 %v1837_v6 }
 0x27d   :  { %1151 = vmatpush3.msra.mxu0 %v678_v18 }
 0x27e   :  { %1152 = vmatprep.subr.mxu0 %v1837_v6 }
 0x27f   :  { %1153 = vmatpush3.msra.mxu0 %v677_v20 }
 0x280   :  { %1154 = vmatprep.subr.mxu0 %v1837_v6 }
 0x281   :  { %1155 = vmatpush3.msra.mxu0 %v676_v22 }
 0x282   :  { %1156 = vmatprep.subr.mxu0 %v1837_v6 }
 0x283   :  { %1157 = vmatpush3.msra.mxu0 %v675_v24 }
 0x284   :  { %1158 = vmatprep.subr.mxu0 %v1837_v6 }
 0x285   :  { %1159 = vmatpush3.msra.mxu0 %v674_v26 }
 0x286   :  { %1160 = vmatprep.subr.mxu0 %v1837_v6 }
 0x287   :  { %1161 = vmatpush3.msra.mxu0 %v673_v28 }
 0x288   :  { %1162 = vmatprep.subr.mxu0 %v1837_v6 }
 0x289   :  { %1163 = vmatpush3.msra.mxu0 %v672_v30 }
 0x28a   :  { %1164 = vmatprep.subr.mxu0 %v1837_v6 }
 0x28b   :  { %1165 = vmatpush3.msra.mxu0 %v671_v32 }
 0x28c   :  { %1166 = vmatprep.subr.mxu0 %v1837_v6 }
 0x28d   :  { %1167 = vmatpush3.msra.mxu0 %v670_v34 }
 0x28e   :  { %1169 = vmatmul.mubr.f32.vlgmr.msra.gmra.mxu0 %v1835_v54  ;;  %1206 = vmatprep.subr.mxu0 %v1837_v6 }
 0x28f   :  { %1208 = vmatprep.mubr.msk.f32.mxu0 %vm1386_vm2, %v1837_v6 }
 0x2b8   :  { %v847_v41 = vpop.permute.xlu0 %846 }
 0x2b9   :  { %vm848_vm3 = vcmp.eq.s32.totalorder %v847_v41, %v843_v40 }
 0x2ba   :  { %v974_v42 = vsel %vm848_vm3, 1.0, %v1837_v6 }
 0x331   :  { %v838_v45 = vpop.f32.mrf.mxu1 }
 0x333   :  { %v1205_v46 = vpop.f32.mrf.mxu1 }
 0x34e   :  { %v752_v43 = vpop.f32.mrf.mxu0 }
 0x34f   :  { %1207 = vmatpush3.msra.mxu0 %v752_v43 }
 0x350   :  { %v1170_v44 = vpop.f32.mrf.mxu0  ;;  %1209 = vmatmul.mubr.msk.f32.vlgmr.msra.gmra.mxu0 %vm851_vm4, %v974_v42 }
 0x410   :  { %v921_v47 = vpop.f32.mrf.mxu0 }
 0x411   :  { %v922_v49 = vadd.f32 %v921_v47, %v838_v45 }
 0x412   :  { %v1210_v50 = vpop.f32.mrf.mxu0 }
 0x413   :  { %v932_v53 = vadd.f32 %v976_v48, %v922_v49 }
 0x415   :  { %v933_v5 = vmax.f32 %v932_v53, 0.0 }
 0x417   :  { %v941_v57 = vmul.f32 %v977_v2, %v933_v5 }
 0x419   :  { %942 = vadd.xlane.f32.xlu0 %v941_v57 }
 0x4a2   :  { %v943_v8 = vpop.xlane.xlu0 %942 }
 0x4a3   :  { %v951_v61 = vadd.f32 %v978_v51, %v943_v8 }
 0x4a5   :  { %953 = vst.msk [vmem:[%s1802_s12] sm:$0xff] %vm952_vm5, %v951_v61 }
 0x4a6   :  { %958 = vsyncpa [#allocation5], 1 }
 0x4a7   :  { %959 = vsyncpa [#allocation7], 1 }
 0x4a8   :  { %960 = vsyncpa [#allocation10], 1 }

</bundles_post_ra>
